<compile_context>
chip_gen: v7x
topology: tpu7x:2x2x1
jax: 0.10.0
libtpu: 0.0.40
codegen_flags: <defaults>
</compile_context>

<pallas_src>
import numpy as np

import jax
import jax.numpy as jnp
from jax import lax
from jax.experimental import pallas as pl
from jax.experimental.pallas import tpu as pltpu  # noqa: F401  (no TPU-specific params needed at these sizes)

_BASE = 4      # base spatial grid: every layer runs on a 4x4 grid
_WPAD = 6      # padded base grid (4x4 interior + 1-pixel zero ring)
MXU_DTYPE = jnp.bfloat16


# ----------------------------------------------------------------------------
# The single fused kernel
# ----------------------------------------------------------------------------
def _vae_fused_kernel(x_ref, eps_ref, mask_ref,
                      w1_ref, b1_ref, w2_ref, b2_ref, wml_ref, bml_ref,
                      wd1_ref, bd1_ref, wd2_ref, bd2_ref,
                      ml_ref, xr_ref):
    """Whole VAE forward; every intermediate stays in VMEM.

    Activations are 2D (channels, M) where M = zero-padded, flattened base grid
    (n, ys, xs).  Each conv / conv-transpose is a 3x3 stride-1 conv on this
    grid (spatial phases folded into channels on the host), so im2col is just
    9 static lane shifts + concat.
    """
    mask = mask_ref[...]                                    # (1, M) f32, 1 at interior cols

    def shift_cols(a, s):
        # result[:, m] = a[:, m + s]; wrapped columns only land on discarded ring cols.
        if s == 0:
            return a
        return jnp.concatenate([a[:, s:], a[:, :s]], axis=1)

    def patches(a):                                         # (C, M) -> (9*C, M)
        taps = []
        for dy in (-1, 0, 1):
            for dx in (-1, 0, 1):
                taps.append(shift_cols(a, dy * _WPAD + dx))
        return jnp.concatenate(taps, axis=0)

    def conv3x3(w_ref, b_ref, a_bf16, relu):
        y = jnp.dot(w_ref[...], patches(a_bf16),
                    preferred_element_type=jnp.float32) + b_ref[...]
        if relu:
            y = jnp.maximum(y, 0.0)
        return y * mask                                     # keep the zero ring exact

    # Encoder conv1 (4x4 stride-2, folded onto base grid) + ReLU   -> (4*hd, M)
    h1 = conv3x3(w1_ref, b1_ref, x_ref[...], relu=True)
    # Encoder conv2 (4x4 stride-2, folded) + ReLU                  -> (2*hd, M)
    h2 = conv3x3(w2_ref, b2_ref, h1.astype(MXU_DTYPE), relu=True)

    # conv_mu / conv_logvar (1x1) in f32, written as one combined output.
    ml = jnp.dot(wml_ref[...], h2, preferred_element_type=jnp.float32) + bml_ref[...]
    ml_ref[...] = ml                                        # (2E, M): [mu ; logvar]

    # Reparameterized sample z = mu + exp(0.5 * logvar) * eps (training mode).
    E = eps_ref.shape[0]
    z = (ml[:E] + jnp.exp(ml[E:] * 0.5) * eps_ref[...]) * mask

    # Decoder ConvTranspose #1 (4x4 s2 p1, phase-decomposed) + ReLU -> (4*hd, M)
    d1 = conv3x3(wd1_ref, bd1_ref, z.astype(MXU_DTYPE), relu=True)

    # Decoder ConvTranspose #2 (composed onto base grid) + sigmoid  -> (16, M)
    logits = jnp.dot(wd2_ref[...], patches(d1.astype(MXU_DTYPE)),
                     preferred_element_type=jnp.float32) + bd2_ref[...]
    xr_ref[...] = jax.nn.sigmoid(logits)


# ----------------------------------------------------------------------------
# Host-side layout helpers (only touch the kernel's inputs / outputs)
# ----------------------------------------------------------------------------
def _pad_flatten(a):
    """(C, N, 4, 4) -> (C, Mp): add zero ring, flatten (n, ys, xs), pad M to 128-mult."""
    C, N = a.shape[0], a.shape[1]
    a = jnp.pad(a, ((0, 0), (0, 0), (1, 1), (1, 1)))
    a = a.reshape(C, N * _WPAD * _WPAD)
    m = a.shape[1]
    mp = ((m + 127) // 128) * 128
    return jnp.pad(a, ((0, 0), (0, mp - m)))


def _space_to_depth(x_nchw):
    """(N, 1, 16, 16) -> (16, N, 4, 4): within-4x4-block position -> channel q = u*4 + v."""
    N = x_nchw.shape[0]
    x = x_nchw[:, 0].reshape(N, 4, 4, 4, 4)                 # (N, ys, u, xs, v)
    return jnp.transpose(x, (2, 4, 0, 1, 3)).reshape(16, N, 4, 4)


# ----------------------------------------------------------------------------
# VAE forward: one pallas_call, host code only prepares x/eps and unpacks outputs
# ----------------------------------------------------------------------------
@jax.jit
def vae_forward(x_nchw, prep, eps4):
    """x_nchw: (N,1,16,16); eps4: (E,N,4,4) rsample noise."""
    N = x_nchw.shape[0]
    E = eps4.shape[0]

    x_in = _pad_flatten(_space_to_depth(x_nchw.astype(jnp.float32))).astype(MXU_DTYPE)
    eps_in = _pad_flatten(eps4.astype(jnp.float32))
    mask = _pad_flatten(jnp.ones((1, N, _BASE, _BASE), jnp.float32))
    Mp = x_in.shape[1]

    args = (x_in, eps_in, mask,
            prep["w1"], prep["b1"], prep["w2"], prep["b2"], prep["wml"], prep["bml"],
            prep["wd1"], prep["bd1"], prep["wd2"], prep["bd2"])
    full = lambda a: pl.BlockSpec(a.shape, lambda: (0, 0))

    ml, xr = pl.pallas_call(
        _vae_fused_kernel,
        out_shape=(jax.ShapeDtypeStruct((2 * E, Mp), jnp.float32),
                   jax.ShapeDtypeStruct((16, Mp), jnp.float32)),
        in_specs=[full(a) for a in args],
        out_specs=(pl.BlockSpec((2 * E, Mp), lambda: (0, 0)),
                   pl.BlockSpec((16, Mp), lambda: (0, 0))),
    )(*args)

    def interior(a, C):                                     # (C, Mp) -> (C, N, 4, 4)
        a = a[:, :N * _WPAD * _WPAD].reshape(C, N, _WPAD, _WPAD)
        return a[:, :, 1:-1, 1:-1]

    ml_i = interior(ml, 2 * E)
    mu = jnp.transpose(ml_i[:E], (1, 0, 2, 3))              # (N, E, 4, 4)
    logvar = jnp.transpose(ml_i[E:], (1, 0, 2, 3))

    r = interior(xr, 16).reshape(4, 4, N, _BASE, _BASE)     # (u, v, n, ys, xs)
    x_recon = jnp.transpose(r, (2, 3, 0, 4, 1)).reshape(N, 1, 16, 16)
    return x_recon, mu, logvar


# ----------------------------------------------------------------------------
# Parameters: PyTorch layouts -> folded / phase-decomposed matmul weights
# ----------------------------------------------------------------------------
def init_params(key, hidden_dim, embedding_dim):
    ks = jax.random.split(key, 12)
    n = lambda k, shape: jax.random.normal(k, shape, jnp.float32) * 0.1
    return {
        "e_w1": n(ks[0], (hidden_dim, 1, 4, 4)),                 "e_b1": n(ks[1], (hidden_dim,)),
        "e_w2": n(ks[2], (hidden_dim * 2, hidden_dim, 4, 4)),    "e_b2": n(ks[3], (hidden_dim * 2,)),
        "e_wmu": n(ks[4], (embedding_dim, hidden_dim * 2, 1, 1)), "e_bmu": n(ks[5], (embedding_dim,)),
        "e_wlv": n(ks[6], (embedding_dim, hidden_dim * 2, 1, 1)), "e_blv": n(ks[7], (embedding_dim,)),
        "d_w2": n(ks[8], (embedding_dim, hidden_dim, 4, 4)),     "d_b2": n(ks[9], (hidden_dim,)),
        "d_w1": n(ks[10], (hidden_dim, 1, 4, 4)),                "d_b1": n(ks[11], (1,)),
    }


def prepare_params(p):
    """One-time (numpy, host) rearrangement into 3x3-on-base-grid matmul weights."""
    hd = p["e_w1"].shape[0]
    E = p["e_wmu"].shape[0]
    t_of = lambda dy, dx: (dy + 1) * 3 + (dx + 1)

    def split4(r):   # pixel offset in {-1..4} -> (base-grid offset, within-block index)
        if r < 0:
            return -1, r + 4
        if r > 3:
            return 1, r - 4
        return 0, r

    # Encoder conv1: Conv2d(1, hd, 4, s2, p1) on the space-to-depth'd input.
    w1 = np.asarray(p["e_w1"], np.float32)
    W1 = np.zeros((4 * hd, 9 * 16), np.float32)              # rows: phase-major (p*hd + co)
    for py in range(2):
        for px in range(2):
            ph = py * 2 + px
            for ky in range(4):
                dy, u = split4(2 * py + ky - 1)
                for kx in range(4):
                    dx, v = split4(2 * px + kx - 1)
                    W1[ph * hd:(ph + 1) * hd, t_of(dy, dx) * 16 + u * 4 + v] = w1[:, 0, ky, kx]
    b1 = np.tile(np.asarray(p["e_b1"], np.float32), 4).reshape(-1, 1)

    # Encoder conv2: Conv2d(hd, 2hd, 4, s2, p1) consuming phase-major h1 channels.
    w2 = np.asarray(p["e_w2"], np.float32)
    C1 = 4 * hd
    k2phase = [(-1, 1), (0, 0), (0, 1), (1, 0)]              # kernel index -> (base offset, parity)
    W2 = np.zeros((2 * hd, 9 * C1), np.float32)
    for ky in range(4):
        dy, py = k2phase[ky]
        for kx in range(4):
            dx, px = k2phase[kx]
            c0 = t_of(dy, dx) * C1 + (py * 2 + px) * hd
            W2[:, c0:c0 + hd] = w2[:, :, ky, kx]
    b2 = np.asarray(p["e_b2"], np.float32).reshape(-1, 1)

    # conv_mu / conv_logvar (1x1), combined.
    Wml = np.concatenate([np.asarray(p["e_wmu"], np.float32)[:, :, 0, 0],
                          np.asarray(p["e_wlv"], np.float32)[:, :, 0, 0]], axis=0)
    bml = np.concatenate([np.asarray(p["e_bmu"], np.float32),
                          np.asarray(p["e_blv"], np.float32)]).reshape(-1, 1)

    # Decoder ConvTranspose #1: (E, hd, 4, 4), k4 s2 p1, phase-decomposed.
    wt2 = np.asarray(p["d_w2"], np.float32)
    ct_taps = {0: ((0, 1), (-1, 3)), 1: ((0, 2), (1, 0))}    # output parity -> ((d, k), ...)
    WD1 = np.zeros((4 * hd, 9 * E), np.float32)
    for py in range(2):
        for px in range(2):
            ph = py * 2 + px
            for dy, ky in ct_taps[py]:
                for dx, kx in ct_taps[px]:
                    t = t_of(dy, dx)
                    WD1[ph * hd:(ph + 1) * hd, t * E:(t + 1) * E] = wt2[:, :, ky, kx].T
    bd1 = np.tile(np.asarray(p["d_b2"], np.float32), 4).reshape(-1, 1)

    # Decoder ConvTranspose #2: (hd, 1, 4, 4), composed onto the 4x4 base grid; output
    # channels are the 16 within-block positions (u*4 + v) of the final 16x16 image.
    wt1 = np.asarray(p["d_w1"], np.float32)
    CD = 4 * hd
    out_taps = {0: ((1, 0, 0), (3, 1, -1)),                  # u -> ((k, parity of d1 row, base offset), ...)
                1: ((0, 1, 0), (2, 0, 0)),
                2: ((1, 1, 0), (3, 0, 0)),
                3: ((0, 0, 1), (2, 1, 0))}
    WD2 = np.zeros((16, 9 * CD), np.float32)
    for u in range(4):
        for v in range(4):
            o = u * 4 + v
            for ky, py1, dy in out_taps[u]:
                for kx, px1, dx in out_taps[v]:
                    c0 = t_of(dy, dx) * CD + (py1 * 2 + px1) * hd
                    WD2[o, c0:c0 + hd] = wt1[:, 0, ky, kx]
    bd2 = np.full((16, 1), float(np.asarray(p["d_b1"])[0]), np.float32)

    bf = lambda a: jnp.asarray(a, MXU_DTYPE)
    f32 = lambda a: jnp.asarray(a, jnp.float32)
    return {"w1": bf(W1), "b1": f32(b1), "w2": bf(W2), "b2": f32(b2),
            "wml": f32(Wml), "bml": f32(bml),
            "wd1": bf(WD1), "bd1": f32(bd1), "wd2": bf(WD2), "bd2": f32(bd2)}


# ----------------------------------------------------------------------------
# Pure-XLA f32 reference of the PyTorch module (for in-script validation)
# ----------------------------------------------------------------------------
def _ref_forward(x, p, eps4):
    f = jnp.float32
    dn = ("NCHW", "OIHW", "NCHW")

    def conv(a, w, b, stride, pad):
        dnn = lax.conv_dimension_numbers(a.shape, w.shape, dn)
        y = lax.conv_general_dilated(a, w.astype(f), (stride, stride),
                                     [(pad, pad), (pad, pad)], dimension_numbers=dnn,
                                     precision=lax.Precision.HIGHEST)
        return y + b.astype(f)[None, :, None, None]

    def convT(a, w, b):   # ConvTranspose2d(k=4, s=2, p=1); w: (Cin, Cout, 4, 4)
        wk = jnp.transpose(w[:, :, ::-1, ::-1], (1, 0, 2, 3)).astype(f)
        dnn = lax.conv_dimension_numbers(a.shape, wk.shape, dn)
        y = lax.conv_general_dilated(a, wk, (1, 1), [(2, 2), (2, 2)],
                                     lhs_dilation=(2, 2), dimension_numbers=dnn,
                                     precision=lax.Precision.HIGHEST)
        return y + b.astype(f)[None, :, None, None]

    x = x.astype(f)
    h1 = jax.nn.relu(conv(x, p["e_w1"], p["e_b1"], 2, 1))
    h2 = jax.nn.relu(conv(h1, p["e_w2"], p["e_b2"], 2, 1))
    mu = conv(h2, p["e_wmu"], p["e_bmu"], 1, 0)
    lv = conv(h2, p["e_wlv"], p["e_blv"], 1, 0)
    z = mu + jnp.exp(0.5 * lv) * jnp.transpose(eps4, (1, 0, 2, 3))
    d1 = jax.nn.relu(convT(z, p["d_w2"], p["d_b2"]))
    xr = jax.nn.sigmoid(convT(d1, p["d_w1"], p["d_b1"]))
    return xr, mu, lv


# ----------------------------------------------------------------------------
if __name__ == "__main__":
    hidden_dim, embedding_dim, N = 8, 4, 2

    key = jax.random.PRNGKey(0)
    k_x, k_p, k_eps = jax.random.split(key, 3)

    x = jax.random.normal(k_x, (N, 1, 16, 16), jnp.float32)
    params = init_params(k_p, hidden_dim, embedding_dim)
    prep = prepare_params(params)
    # Training-mode rsample noise, one N(0,1) draw per latent element.
    eps4 = jax.random.normal(k_eps, (embedding_dim, N, 4, 4), jnp.float32)

    x_recon, mu, logvar = vae_forward(x, prep, eps4)
    jax.block_until_ready((x_recon, mu, logvar))

    assert x_recon.shape == (N, 1, 16, 16)
    assert mu.shape == (N, embedding_dim, 4, 4)
    assert logvar.shape == (N, embedding_dim, 4, 4)

    # Validate the phase/fold decomposition against the f32 XLA reference (same noise).
    xr_ref, mu_ref, lv_ref = _ref_forward(x, params, eps4)
    jax.block_until_ready((xr_ref, mu_ref, lv_ref))
    assert float(jnp.max(jnp.abs(mu - mu_ref))) < 5e-2
    assert float(jnp.max(jnp.abs(logvar - lv_ref))) < 5e-2
    assert float(jnp.max(jnp.abs(x_recon - xr_ref))) < 5e-2

    print("KERNEL_OK")
</pallas_src>

<mosaic_0001>
module attributes {stable_mosaic.version = 11 : i64} {
  func.func @_vae_fused_kernel(%arg0: memref<16x128xbf16, #tpu.memory_space<vmem>>, %arg1: memref<4x128xf32, #tpu.memory_space<vmem>>, %arg2: memref<1x128xf32, #tpu.memory_space<vmem>>, %arg3: memref<32x144xbf16, #tpu.memory_space<vmem>>, %arg4: memref<32x1xf32, #tpu.memory_space<vmem>>, %arg5: memref<16x288xbf16, #tpu.memory_space<vmem>>, %arg6: memref<16x1xf32, #tpu.memory_space<vmem>>, %arg7: memref<8x16xf32, #tpu.memory_space<vmem>>, %arg8: memref<8x1xf32, #tpu.memory_space<vmem>>, %arg9: memref<32x36xbf16, #tpu.memory_space<vmem>>, %arg10: memref<32x1xf32, #tpu.memory_space<vmem>>, %arg11: memref<16x288xbf16, #tpu.memory_space<vmem>>, %arg12: memref<16x1xf32, #tpu.memory_space<vmem>>, %arg13: memref<8x128xf32, #tpu.memory_space<vmem>>, %arg14: memref<16x128xf32, #tpu.memory_space<vmem>>) attributes {dimension_semantics = [], scalar_prefetch = 0 : i64, scratch_operands = 0 : i64, tpu.core_type = #tpu.core_type<tc>} {
    %c0 = arith.constant 0 : index
    %c0_0 = arith.constant 0 : index
    %0 = vector.load %arg2[%c0, %c0_0] : memref<1x128xf32, #tpu.memory_space<vmem>>, vector<1x128xf32>
    %c0_1 = arith.constant 0 : index
    %c0_2 = arith.constant 0 : index
    %1 = vector.load %arg0[%c0_1, %c0_2] : memref<16x128xbf16, #tpu.memory_space<vmem>>, vector<16x128xbf16>
    %c0_3 = arith.constant 0 : index
    %c0_4 = arith.constant 0 : index
    %2 = vector.load %arg3[%c0_3, %c0_4] : memref<32x144xbf16, #tpu.memory_space<vmem>>, vector<32x144xbf16>
    %3 = vector.extract_strided_slice %1 {offsets = [0, 121], sizes = [16, 7], strides = [1, 1]} : vector<16x128xbf16> to vector<16x7xbf16>
    %4 = vector.extract_strided_slice %1 {offsets = [0, 0], sizes = [16, 121], strides = [1, 1]} : vector<16x128xbf16> to vector<16x121xbf16>
    %5 = tpu.concatenate %3, %4 in 1 : vector<16x7xbf16>, vector<16x121xbf16> -> vector<16x128xbf16>
    %6 = vector.extract_strided_slice %1 {offsets = [0, 122], sizes = [16, 6], strides = [1, 1]} : vector<16x128xbf16> to vector<16x6xbf16>
    %7 = vector.extract_strided_slice %1 {offsets = [0, 0], sizes = [16, 122], strides = [1, 1]} : vector<16x128xbf16> to vector<16x122xbf16>
    %8 = tpu.concatenate %6, %7 in 1 : vector<16x6xbf16>, vector<16x122xbf16> -> vector<16x128xbf16>
    %9 = vector.extract_strided_slice %1 {offsets = [0, 123], sizes = [16, 5], strides = [1, 1]} : vector<16x128xbf16> to vector<16x5xbf16>
    %10 = vector.extract_strided_slice %1 {offsets = [0, 0], sizes = [16, 123], strides = [1, 1]} : vector<16x128xbf16> to vector<16x123xbf16>
    %11 = tpu.concatenate %9, %10 in 1 : vector<16x5xbf16>, vector<16x123xbf16> -> vector<16x128xbf16>
    %12 = vector.extract_strided_slice %1 {offsets = [0, 127], sizes = [16, 1], strides = [1, 1]} : vector<16x128xbf16> to vector<16x1xbf16>
    %13 = vector.extract_strided_slice %1 {offsets = [0, 0], sizes = [16, 127], strides = [1, 1]} : vector<16x128xbf16> to vector<16x127xbf16>
    %14 = tpu.concatenate %12, %13 in 1 : vector<16x1xbf16>, vector<16x127xbf16> -> vector<16x128xbf16>
    %15 = vector.extract_strided_slice %1 {offsets = [0, 1], sizes = [16, 127], strides = [1, 1]} : vector<16x128xbf16> to vector<16x127xbf16>
    %16 = vector.extract_strided_slice %1 {offsets = [0, 0], sizes = [16, 1], strides = [1, 1]} : vector<16x128xbf16> to vector<16x1xbf16>
    %17 = tpu.concatenate %15, %16 in 1 : vector<16x127xbf16>, vector<16x1xbf16> -> vector<16x128xbf16>
    %18 = vector.extract_strided_slice %1 {offsets = [0, 5], sizes = [16, 123], strides = [1, 1]} : vector<16x128xbf16> to vector<16x123xbf16>
    %19 = vector.extract_strided_slice %1 {offsets = [0, 0], sizes = [16, 5], strides = [1, 1]} : vector<16x128xbf16> to vector<16x5xbf16>
    %20 = tpu.concatenate %18, %19 in 1 : vector<16x123xbf16>, vector<16x5xbf16> -> vector<16x128xbf16>
    %21 = vector.extract_strided_slice %1 {offsets = [0, 6], sizes = [16, 122], strides = [1, 1]} : vector<16x128xbf16> to vector<16x122xbf16>
    %22 = vector.extract_strided_slice %1 {offsets = [0, 0], sizes = [16, 6], strides = [1, 1]} : vector<16x128xbf16> to vector<16x6xbf16>
    %23 = tpu.concatenate %21, %22 in 1 : vector<16x122xbf16>, vector<16x6xbf16> -> vector<16x128xbf16>
    %24 = vector.extract_strided_slice %1 {offsets = [0, 7], sizes = [16, 121], strides = [1, 1]} : vector<16x128xbf16> to vector<16x121xbf16>
    %25 = vector.extract_strided_slice %1 {offsets = [0, 0], sizes = [16, 7], strides = [1, 1]} : vector<16x128xbf16> to vector<16x7xbf16>
    %26 = tpu.concatenate %24, %25 in 1 : vector<16x121xbf16>, vector<16x7xbf16> -> vector<16x128xbf16>
    %27 = tpu.concatenate %5, %8, %11, %14, %1, %17, %20, %23, %26 in 0 : vector<16x128xbf16>, vector<16x128xbf16>, vector<16x128xbf16>, vector<16x128xbf16>, vector<16x128xbf16>, vector<16x128xbf16>, vector<16x128xbf16>, vector<16x128xbf16>, vector<16x128xbf16> -> vector<144x128xbf16>
    %cst = arith.constant dense<0.000000e+00> : vector<32x128xf32>
    %28 = tpu.matmul %2, %27, %cst {dimension_numbers = #tpu.dot_dimension_numbers<[1], [0], [0], [1], [0, 0, 1, 1], [], []>} : vector<32x144xbf16>, vector<144x128xbf16>, vector<32x128xf32> -> vector<32x128xf32>
    %c0_5 = arith.constant 0 : index
    %c0_6 = arith.constant 0 : index
    %29 = vector.load %arg4[%c0_5, %c0_6] : memref<32x1xf32, #tpu.memory_space<vmem>>, vector<32x1xf32>
    %30 = vector.broadcast %29 : vector<32x1xf32> to vector<32x128xf32>
    %31 = arith.addf %28, %30 : vector<32x128xf32>
    %cst_7 = arith.constant 0.000000e+00 : f32
    %32 = vector.broadcast %cst_7 : f32 to vector<32x128xf32>
    %33 = arith.maximumf %31, %32 : vector<32x128xf32>
    %34 = vector.broadcast %0 : vector<1x128xf32> to vector<32x128xf32>
    %35 = arith.mulf %33, %34 : vector<32x128xf32>
    %36 = arith.truncf %35 : vector<32x128xf32> to vector<32x128xbf16>
    %c0_8 = arith.constant 0 : index
    %c0_9 = arith.constant 0 : index
    %37 = vector.load %arg5[%c0_8, %c0_9] : memref<16x288xbf16, #tpu.memory_space<vmem>>, vector<16x288xbf16>
    %38 = vector.extract_strided_slice %36 {offsets = [0, 121], sizes = [32, 7], strides = [1, 1]} : vector<32x128xbf16> to vector<32x7xbf16>
    %39 = vector.extract_strided_slice %36 {offsets = [0, 0], sizes = [32, 121], strides = [1, 1]} : vector<32x128xbf16> to vector<32x121xbf16>
    %40 = tpu.concatenate %38, %39 in 1 : vector<32x7xbf16>, vector<32x121xbf16> -> vector<32x128xbf16>
    %41 = vector.extract_strided_slice %36 {offsets = [0, 122], sizes = [32, 6], strides = [1, 1]} : vector<32x128xbf16> to vector<32x6xbf16>
    %42 = vector.extract_strided_slice %36 {offsets = [0, 0], sizes = [32, 122], strides = [1, 1]} : vector<32x128xbf16> to vector<32x122xbf16>
    %43 = tpu.concatenate %41, %42 in 1 : vector<32x6xbf16>, vector<32x122xbf16> -> vector<32x128xbf16>
    %44 = vector.extract_strided_slice %36 {offsets = [0, 123], sizes = [32, 5], strides = [1, 1]} : vector<32x128xbf16> to vector<32x5xbf16>
    %45 = vector.extract_strided_slice %36 {offsets = [0, 0], sizes = [32, 123], strides = [1, 1]} : vector<32x128xbf16> to vector<32x123xbf16>
    %46 = tpu.concatenate %44, %45 in 1 : vector<32x5xbf16>, vector<32x123xbf16> -> vector<32x128xbf16>
    %47 = vector.extract_strided_slice %36 {offsets = [0, 127], sizes = [32, 1], strides = [1, 1]} : vector<32x128xbf16> to vector<32x1xbf16>
    %48 = vector.extract_strided_slice %36 {offsets = [0, 0], sizes = [32, 127], strides = [1, 1]} : vector<32x128xbf16> to vector<32x127xbf16>
    %49 = tpu.concatenate %47, %48 in 1 : vector<32x1xbf16>, vector<32x127xbf16> -> vector<32x128xbf16>
    %50 = vector.extract_strided_slice %36 {offsets = [0, 1], sizes = [32, 127], strides = [1, 1]} : vector<32x128xbf16> to vector<32x127xbf16>
    %51 = vector.extract_strided_slice %36 {offsets = [0, 0], sizes = [32, 1], strides = [1, 1]} : vector<32x128xbf16> to vector<32x1xbf16>
    %52 = tpu.concatenate %50, %51 in 1 : vector<32x127xbf16>, vector<32x1xbf16> -> vector<32x128xbf16>
    %53 = vector.extract_strided_slice %36 {offsets = [0, 5], sizes = [32, 123], strides = [1, 1]} : vector<32x128xbf16> to vector<32x123xbf16>
    %54 = vector.extract_strided_slice %36 {offsets = [0, 0], sizes = [32, 5], strides = [1, 1]} : vector<32x128xbf16> to vector<32x5xbf16>
    %55 = tpu.concatenate %53, %54 in 1 : vector<32x123xbf16>, vector<32x5xbf16> -> vector<32x128xbf16>
    %56 = vector.extract_strided_slice %36 {offsets = [0, 6], sizes = [32, 122], strides = [1, 1]} : vector<32x128xbf16> to vector<32x122xbf16>
    %57 = vector.extract_strided_slice %36 {offsets = [0, 0], sizes = [32, 6], strides = [1, 1]} : vector<32x128xbf16> to vector<32x6xbf16>
    %58 = tpu.concatenate %56, %57 in 1 : vector<32x122xbf16>, vector<32x6xbf16> -> vector<32x128xbf16>
    %59 = vector.extract_strided_slice %36 {offsets = [0, 7], sizes = [32, 121], strides = [1, 1]} : vector<32x128xbf16> to vector<32x121xbf16>
    %60 = vector.extract_strided_slice %36 {offsets = [0, 0], sizes = [32, 7], strides = [1, 1]} : vector<32x128xbf16> to vector<32x7xbf16>
    %61 = tpu.concatenate %59, %60 in 1 : vector<32x121xbf16>, vector<32x7xbf16> -> vector<32x128xbf16>
    %62 = tpu.concatenate %40, %43, %46, %49, %36, %52, %55, %58, %61 in 0 : vector<32x128xbf16>, vector<32x128xbf16>, vector<32x128xbf16>, vector<32x128xbf16>, vector<32x128xbf16>, vector<32x128xbf16>, vector<32x128xbf16>, vector<32x128xbf16>, vector<32x128xbf16> -> vector<288x128xbf16>
    %cst_10 = arith.constant dense<0.000000e+00> : vector<16x128xf32>
    %63 = tpu.matmul %37, %62, %cst_10 {dimension_numbers = #tpu.dot_dimension_numbers<[1], [0], [0], [1], [0, 0, 1, 1], [], []>} : vector<16x288xbf16>, vector<288x128xbf16>, vector<16x128xf32> -> vector<16x128xf32>
    %c0_11 = arith.constant 0 : index
    %c0_12 = arith.constant 0 : index
    %64 = vector.load %arg6[%c0_11, %c0_12] : memref<16x1xf32, #tpu.memory_space<vmem>>, vector<16x1xf32>
    %65 = vector.broadcast %64 : vector<16x1xf32> to vector<16x128xf32>
    %66 = arith.addf %63, %65 : vector<16x128xf32>
    %cst_13 = arith.constant 0.000000e+00 : f32
    %67 = vector.broadcast %cst_13 : f32 to vector<16x128xf32>
    %68 = arith.maximumf %66, %67 : vector<16x128xf32>
    %69 = vector.broadcast %0 : vector<1x128xf32> to vector<16x128xf32>
    %70 = arith.mulf %68, %69 : vector<16x128xf32>
    %c0_14 = arith.constant 0 : index
    %c0_15 = arith.constant 0 : index
    %71 = vector.load %arg7[%c0_14, %c0_15] : memref<8x16xf32, #tpu.memory_space<vmem>>, vector<8x16xf32>
    %cst_16 = arith.constant dense<0.000000e+00> : vector<8x128xf32>
    %72 = tpu.matmul %71, %70, %cst_16 {dimension_numbers = #tpu.dot_dimension_numbers<[1], [0], [0], [1], [0, 0, 1, 1], [], []>} : vector<8x16xf32>, vector<16x128xf32>, vector<8x128xf32> -> vector<8x128xf32>
    %c0_17 = arith.constant 0 : index
    %c0_18 = arith.constant 0 : index
    %73 = vector.load %arg8[%c0_17, %c0_18] : memref<8x1xf32, #tpu.memory_space<vmem>>, vector<8x1xf32>
    %74 = vector.broadcast %73 : vector<8x1xf32> to vector<8x128xf32>
    %75 = arith.addf %72, %74 : vector<8x128xf32>
    %c0_19 = arith.constant 0 : index
    %c0_20 = arith.constant 0 : index
    %76 = vector.load %arg13[%c0_19, %c0_20] : memref<8x128xf32, #tpu.memory_space<vmem>>, vector<8x128xf32>
    tpu.vector_store %arg13[%c0_19, %c0_20], %75 {strides = array<i32>} : memref<8x128xf32, #tpu.memory_space<vmem>>, vector<8x128xf32>,
    %77 = vector.extract_strided_slice %75 {offsets = [0, 0], sizes = [4, 128], strides = [1, 1]} : vector<8x128xf32> to vector<4x128xf32>
    %78 = vector.extract_strided_slice %75 {offsets = [4, 0], sizes = [4, 128], strides = [1, 1]} : vector<8x128xf32> to vector<4x128xf32>
    %cst_21 = arith.constant 5.000000e-01 : f32
    %79 = vector.broadcast %cst_21 : f32 to vector<4x128xf32>
    %80 = arith.mulf %78, %79 : vector<4x128xf32>
    %81 = math.exp %80 : vector<4x128xf32>
    %c0_22 = arith.constant 0 : index
    %c0_23 = arith.constant 0 : index
    %82 = vector.load %arg1[%c0_22, %c0_23] : memref<4x128xf32, #tpu.memory_space<vmem>>, vector<4x128xf32>
    %83 = arith.mulf %81, %82 : vector<4x128xf32>
    %84 = arith.addf %77, %83 : vector<4x128xf32>
    %85 = vector.broadcast %0 : vector<1x128xf32> to vector<4x128xf32>
    %86 = arith.mulf %84, %85 : vector<4x128xf32>
    %87 = arith.truncf %86 : vector<4x128xf32> to vector<4x128xbf16>
    %c0_24 = arith.constant 0 : index
    %c0_25 = arith.constant 0 : index
    %88 = vector.load %arg9[%c0_24, %c0_25] : memref<32x36xbf16, #tpu.memory_space<vmem>>, vector<32x36xbf16>
    %89 = vector.extract_strided_slice %87 {offsets = [0, 121], sizes = [4, 7], strides = [1, 1]} : vector<4x128xbf16> to vector<4x7xbf16>
    %90 = vector.extract_strided_slice %87 {offsets = [0, 0], sizes = [4, 121], strides = [1, 1]} : vector<4x128xbf16> to vector<4x121xbf16>
    %91 = tpu.concatenate %89, %90 in 1 : vector<4x7xbf16>, vector<4x121xbf16> -> vector<4x128xbf16>
    %92 = vector.extract_strided_slice %87 {offsets = [0, 122], sizes = [4, 6], strides = [1, 1]} : vector<4x128xbf16> to vector<4x6xbf16>
    %93 = vector.extract_strided_slice %87 {offsets = [0, 0], sizes = [4, 122], strides = [1, 1]} : vector<4x128xbf16> to vector<4x122xbf16>
    %94 = tpu.concatenate %92, %93 in 1 : vector<4x6xbf16>, vector<4x122xbf16> -> vector<4x128xbf16>
    %95 = vector.extract_strided_slice %87 {offsets = [0, 123], sizes = [4, 5], strides = [1, 1]} : vector<4x128xbf16> to vector<4x5xbf16>
    %96 = vector.extract_strided_slice %87 {offsets = [0, 0], sizes = [4, 123], strides = [1, 1]} : vector<4x128xbf16> to vector<4x123xbf16>
    %97 = tpu.concatenate %95, %96 in 1 : vector<4x5xbf16>, vector<4x123xbf16> -> vector<4x128xbf16>
    %98 = vector.extract_strided_slice %87 {offsets = [0, 127], sizes = [4, 1], strides = [1, 1]} : vector<4x128xbf16> to vector<4x1xbf16>
    %99 = vector.extract_strided_slice %87 {offsets = [0, 0], sizes = [4, 127], strides = [1, 1]} : vector<4x128xbf16> to vector<4x127xbf16>
    %100 = tpu.concatenate %98, %99 in 1 : vector<4x1xbf16>, vector<4x127xbf16> -> vector<4x128xbf16>
    %101 = vector.extract_strided_slice %87 {offsets = [0, 1], sizes = [4, 127], strides = [1, 1]} : vector<4x128xbf16> to vector<4x127xbf16>
    %102 = vector.extract_strided_slice %87 {offsets = [0, 0], sizes = [4, 1], strides = [1, 1]} : vector<4x128xbf16> to vector<4x1xbf16>
    %103 = tpu.concatenate %101, %102 in 1 : vector<4x127xbf16>, vector<4x1xbf16> -> vector<4x128xbf16>
    %104 = vector.extract_strided_slice %87 {offsets = [0, 5], sizes = [4, 123], strides = [1, 1]} : vector<4x128xbf16> to vector<4x123xbf16>
    %105 = vector.extract_strided_slice %87 {offsets = [0, 0], sizes = [4, 5], strides = [1, 1]} : vector<4x128xbf16> to vector<4x5xbf16>
    %106 = tpu.concatenate %104, %105 in 1 : vector<4x123xbf16>, vector<4x5xbf16> -> vector<4x128xbf16>
    %107 = vector.extract_strided_slice %87 {offsets = [0, 6], sizes = [4, 122], strides = [1, 1]} : vector<4x128xbf16> to vector<4x122xbf16>
    %108 = vector.extract_strided_slice %87 {offsets = [0, 0], sizes = [4, 6], strides = [1, 1]} : vector<4x128xbf16> to vector<4x6xbf16>
    %109 = tpu.concatenate %107, %108 in 1 : vector<4x122xbf16>, vector<4x6xbf16> -> vector<4x128xbf16>
    %110 = vector.extract_strided_slice %87 {offsets = [0, 7], sizes = [4, 121], strides = [1, 1]} : vector<4x128xbf16> to vector<4x121xbf16>
    %111 = vector.extract_strided_slice %87 {offsets = [0, 0], sizes = [4, 7], strides = [1, 1]} : vector<4x128xbf16> to vector<4x7xbf16>
    %112 = tpu.concatenate %110, %111 in 1 : vector<4x121xbf16>, vector<4x7xbf16> -> vector<4x128xbf16>
    %113 = tpu.concatenate %91, %94, %97, %100, %87, %103, %106, %109, %112 in 0 : vector<4x128xbf16>, vector<4x128xbf16>, vector<4x128xbf16>, vector<4x128xbf16>, vector<4x128xbf16>, vector<4x128xbf16>, vector<4x128xbf16>, vector<4x128xbf16>, vector<4x128xbf16> -> vector<36x128xbf16>
    %cst_26 = arith.constant dense<0.000000e+00> : vector<32x128xf32>
    %114 = tpu.matmul %88, %113, %cst_26 {dimension_numbers = #tpu.dot_dimension_numbers<[1], [0], [0], [1], [0, 0, 1, 1], [], []>} : vector<32x36xbf16>, vector<36x128xbf16>, vector<32x128xf32> -> vector<32x128xf32>
    %c0_27 = arith.constant 0 : index
    %c0_28 = arith.constant 0 : index
    %115 = vector.load %arg10[%c0_27, %c0_28] : memref<32x1xf32, #tpu.memory_space<vmem>>, vector<32x1xf32>
    %116 = vector.broadcast %115 : vector<32x1xf32> to vector<32x128xf32>
    %117 = arith.addf %114, %116 : vector<32x128xf32>
    %cst_29 = arith.constant 0.000000e+00 : f32
    %118 = vector.broadcast %cst_29 : f32 to vector<32x128xf32>
    %119 = arith.maximumf %117, %118 : vector<32x128xf32>
    %120 = vector.broadcast %0 : vector<1x128xf32> to vector<32x128xf32>
    %121 = arith.mulf %119, %120 : vector<32x128xf32>
    %c0_30 = arith.constant 0 : index
    %c0_31 = arith.constant 0 : index
    %122 = vector.load %arg11[%c0_30, %c0_31] : memref<16x288xbf16, #tpu.memory_space<vmem>>, vector<16x288xbf16>
    %123 = arith.truncf %121 : vector<32x128xf32> to vector<32x128xbf16>
    %124 = vector.extract_strided_slice %123 {offsets = [0, 121], sizes = [32, 7], strides = [1, 1]} : vector<32x128xbf16> to vector<32x7xbf16>
    %125 = vector.extract_strided_slice %123 {offsets = [0, 0], sizes = [32, 121], strides = [1, 1]} : vector<32x128xbf16> to vector<32x121xbf16>
    %126 = tpu.concatenate %124, %125 in 1 : vector<32x7xbf16>, vector<32x121xbf16> -> vector<32x128xbf16>
    %127 = vector.extract_strided_slice %123 {offsets = [0, 122], sizes = [32, 6], strides = [1, 1]} : vector<32x128xbf16> to vector<32x6xbf16>
    %128 = vector.extract_strided_slice %123 {offsets = [0, 0], sizes = [32, 122], strides = [1, 1]} : vector<32x128xbf16> to vector<32x122xbf16>
    %129 = tpu.concatenate %127, %128 in 1 : vector<32x6xbf16>, vector<32x122xbf16> -> vector<32x128xbf16>
    %130 = vector.extract_strided_slice %123 {offsets = [0, 123], sizes = [32, 5], strides = [1, 1]} : vector<32x128xbf16> to vector<32x5xbf16>
    %131 = vector.extract_strided_slice %123 {offsets = [0, 0], sizes = [32, 123], strides = [1, 1]} : vector<32x128xbf16> to vector<32x123xbf16>
    %132 = tpu.concatenate %130, %131 in 1 : vector<32x5xbf16>, vector<32x123xbf16> -> vector<32x128xbf16>
    %133 = vector.extract_strided_slice %123 {offsets = [0, 127], sizes = [32, 1], strides = [1, 1]} : vector<32x128xbf16> to vector<32x1xbf16>
    %134 = vector.extract_strided_slice %123 {offsets = [0, 0], sizes = [32, 127], strides = [1, 1]} : vector<32x128xbf16> to vector<32x127xbf16>
    %135 = tpu.concatenate %133, %134 in 1 : vector<32x1xbf16>, vector<32x127xbf16> -> vector<32x128xbf16>
    %136 = vector.extract_strided_slice %123 {offsets = [0, 1], sizes = [32, 127], strides = [1, 1]} : vector<32x128xbf16> to vector<32x127xbf16>
    %137 = vector.extract_strided_slice %123 {offsets = [0, 0], sizes = [32, 1], strides = [1, 1]} : vector<32x128xbf16> to vector<32x1xbf16>
    %138 = tpu.concatenate %136, %137 in 1 : vector<32x127xbf16>, vector<32x1xbf16> -> vector<32x128xbf16>
    %139 = vector.extract_strided_slice %123 {offsets = [0, 5], sizes = [32, 123], strides = [1, 1]} : vector<32x128xbf16> to vector<32x123xbf16>
    %140 = vector.extract_strided_slice %123 {offsets = [0, 0], sizes = [32, 5], strides = [1, 1]} : vector<32x128xbf16> to vector<32x5xbf16>
    %141 = tpu.concatenate %139, %140 in 1 : vector<32x123xbf16>, vector<32x5xbf16> -> vector<32x128xbf16>
    %142 = vector.extract_strided_slice %123 {offsets = [0, 6], sizes = [32, 122], strides = [1, 1]} : vector<32x128xbf16> to vector<32x122xbf16>
    %143 = vector.extract_strided_slice %123 {offsets = [0, 0], sizes = [32, 6], strides = [1, 1]} : vector<32x128xbf16> to vector<32x6xbf16>
    %144 = tpu.concatenate %142, %143 in 1 : vector<32x122xbf16>, vector<32x6xbf16> -> vector<32x128xbf16>
    %145 = vector.extract_strided_slice %123 {offsets = [0, 7], sizes = [32, 121], strides = [1, 1]} : vector<32x128xbf16> to vector<32x121xbf16>
    %146 = vector.extract_strided_slice %123 {offsets = [0, 0], sizes = [32, 7], strides = [1, 1]} : vector<32x128xbf16> to vector<32x7xbf16>
    %147 = tpu.concatenate %145, %146 in 1 : vector<32x121xbf16>, vector<32x7xbf16> -> vector<32x128xbf16>
    %148 = tpu.concatenate %126, %129, %132, %135, %123, %138, %141, %144, %147 in 0 : vector<32x128xbf16>, vector<32x128xbf16>, vector<32x128xbf16>, vector<32x128xbf16>, vector<32x128xbf16>, vector<32x128xbf16>, vector<32x128xbf16>, vector<32x128xbf16>, vector<32x128xbf16> -> vector<288x128xbf16>
    %cst_32 = arith.constant dense<0.000000e+00> : vector<16x128xf32>
    %149 = tpu.matmul %122, %148, %cst_32 {dimension_numbers = #tpu.dot_dimension_numbers<[1], [0], [0], [1], [0, 0, 1, 1], [], []>} : vector<16x288xbf16>, vector<288x128xbf16>, vector<16x128xf32> -> vector<16x128xf32>
    %c0_33 = arith.constant 0 : index
    %c0_34 = arith.constant 0 : index
    %150 = vector.load %arg12[%c0_33, %c0_34] : memref<16x1xf32, #tpu.memory_space<vmem>>, vector<16x1xf32>
    %151 = vector.broadcast %150 : vector<16x1xf32> to vector<16x128xf32>
    %152 = arith.addf %149, %151 : vector<16x128xf32>
    %153 = arith.negf %152 : vector<16x128xf32>
    %154 = math.exp %153 : vector<16x128xf32>
    %cst_35 = arith.constant 1.000000e+00 : f32
    %155 = vector.broadcast %cst_35 : f32 to vector<16x128xf32>
    %156 = arith.addf %155, %154 : vector<16x128xf32>
    %157 = arith.divf %155, %156 : vector<16x128xf32>
    %c0_36 = arith.constant 0 : index
    %c0_37 = arith.constant 0 : index
    %158 = vector.load %arg14[%c0_36, %c0_37] : memref<16x128xf32, #tpu.memory_space<vmem>>, vector<16x128xf32>
    tpu.vector_store %arg14[%c0_36, %c0_37], %157 {strides = array<i32>} : memref<16x128xf32, #tpu.memory_space<vmem>>, vector<16x128xf32>,
    return
  }
}

</mosaic_0001>

<bundles_post_ra>
// kernel: squeeze.0
= control target key start
LH: loop header
LB: loop body
LE: loop exit
PB: predicated region body
PF: predicated region fallthrough
CT: control target
= control target key end

     0   :  { %vm66_vm0 = vcmask 31744   ;;  %s529_s10 = smov 124   ;;  %s530_s11 = smov 116   ;;  %v531_v29 = vmov 0.0   ;;  %s708_s0 = inlined_call_operand.vmem [shape: bf16[2,1,16,16], index: 0, kind: input, shape index: {}]   ;;  %s709_s1 = inlined_call_operand.vmem [shape: bf16[2,4,4,4,4], index: 1, kind: output, shape index: {}]  }
   0x1   :  { %v490_v0 = vld [vmem:[%s708_s0] sm:$0xff]   ;;  %v493_v1 = vld [vmem:[%s708_s0 + $0x8] sm:$0xff]   ;;  %s528_s0 = smov 120  }
   0x2   :  { %v491_v2 = vunpack.c.l.bf16 %v490_v0  ;;  %v492_v3 = vunpack.c.h.bf16 %v490_v0  ;;  %v487_v4 = vunpack.c.l.bf16 %v493_v1  ;;  %v488_v5 = vunpack.c.h.bf16 %v493_v1 }
   0x4   :  { %v508_v6 = vpack.i.bf16 %v492_v3, %v491_v2  ;;  %73 = vst.msk [vmem:[#allocation0 + $0x40] ss:$8 sm:$0xf] %vm66_vm0, %v492_v3   ;;  %75 = vst.msk [vmem:[#allocation0 + $0x40] ss:$8 sm:$0xf0] %vm66_vm0, %v492_v3   ;;  %v513_v7 = vpack.i.bf16 %v488_v5, %v487_v4 }
   0x5   :  { %67 = vst.msk [vmem:[#allocation0] ss:$8 sm:$0xf] %vm66_vm0, %v491_v2   ;;  %68 = vst.msk [vmem:[#allocation0] ss:$8 sm:$0xf0] %vm66_vm0, %v491_v2  }
   0x6   :  { %87 = vst.msk [vmem:[#allocation0 + $0xc0] ss:$8 sm:$0xf] %vm66_vm0, %v488_v5   ;;  %89 = vst.msk [vmem:[#allocation0 + $0xc0] ss:$8 sm:$0xf0] %vm66_vm0, %v488_v5   ;;  %509 = vrot.lane.b32.xlu1 %v508_v6, %s528_s0  ;;  %499 = vrot.lane.b32.xlu0 %v508_v6, %s529_s10 }
   0x7   :  { %80 = vst.msk [vmem:[#allocation0 + $0x80] ss:$8 sm:$0xf] %vm66_vm0, %v487_v4   ;;  %82 = vst.msk [vmem:[#allocation0 + $0x80] ss:$8 sm:$0xf0] %vm66_vm0, %v487_v4  }
   0xa   :  { %514 = vrot.lane.b32.xlu1 %v513_v7, %s528_s0  ;;  %504 = vrot.lane.b32.xlu0 %v513_v7, %s529_s10 }
   0xe   :  { %524 = vrot.lane.b32.xlu1 %v513_v7, %s530_s11  ;;  %519 = vrot.lane.b32.xlu0 %v508_v6, %s530_s11 }
  0x78   :  { %v510_v8 = vpop.permute.xlu1 %509  ;;  %v500_v9 = vpop.permute.xlu0 %499 }
  0x79   :  { %v512_v10 = vunpack.i.h.bf16 %v510_v8  ;;  %v511_v11 = vunpack.i.l.bf16 %v510_v8  ;;  %v502_v12 = vunpack.i.h.bf16 %v500_v9  ;;  %v501_v13 = vunpack.i.l.bf16 %v500_v9 }
  0x7b   :  { %139 = vst.msk [vmem:[#allocation0 + $0x42] ss:$8 sm:$0xf] %vm66_vm0, %v512_v10   ;;  %141 = vst.msk [vmem:[#allocation0 + $0x42] ss:$8 sm:$0xf0] %vm66_vm0, %v512_v10  }
  0x7c   :  { %130 = vst.msk [vmem:[#allocation0 + $0x2] ss:$8 sm:$0xf] %vm66_vm0, %v511_v11   ;;  %132 = vst.msk [vmem:[#allocation0 + $0x2] ss:$8 sm:$0xf0] %vm66_vm0, %v511_v11   ;;  %v515_v14 = vpop.permute.xlu1 %514  ;;  %v505_v15 = vpop.permute.xlu0 %504 }
  0x7d   :  { %104 = vst.msk [vmem:[#allocation0 + $0x41] ss:$8 sm:$0xf] %vm66_vm0, %v502_v12   ;;  %106 = vst.msk [vmem:[#allocation0 + $0x41] ss:$8 sm:$0xf0] %vm66_vm0, %v502_v12   ;;  %v517_v16 = vunpack.i.h.bf16 %v515_v14  ;;  %v516_v17 = vunpack.i.l.bf16 %v515_v14  ;;  %v507_v18 = vunpack.i.h.bf16 %v505_v15  ;;  %v506_v19 = vunpack.i.l.bf16 %v505_v15 }
  0x7e   :  { %95 = vst.msk [vmem:[#allocation0 + $0x1] ss:$8 sm:$0xf] %vm66_vm0, %v501_v13   ;;  %97 = vst.msk [vmem:[#allocation0 + $0x1] ss:$8 sm:$0xf0] %vm66_vm0, %v501_v13  }
  0x7f   :  { %157 = vst.msk [vmem:[#allocation0 + $0xc2] ss:$8 sm:$0xf] %vm66_vm0, %v517_v16   ;;  %159 = vst.msk [vmem:[#allocation0 + $0xc2] ss:$8 sm:$0xf0] %vm66_vm0, %v517_v16  }
  0x80   :  { %148 = vst.msk [vmem:[#allocation0 + $0x82] ss:$8 sm:$0xf] %vm66_vm0, %v516_v17   ;;  %150 = vst.msk [vmem:[#allocation0 + $0x82] ss:$8 sm:$0xf0] %vm66_vm0, %v516_v17   ;;  %v525_v20 = vpop.permute.xlu1 %524  ;;  %v520_v21 = vpop.permute.xlu0 %519 }
  0x81   :  { %122 = vst.msk [vmem:[#allocation0 + $0xc1] ss:$8 sm:$0xf] %vm66_vm0, %v507_v18   ;;  %124 = vst.msk [vmem:[#allocation0 + $0xc1] ss:$8 sm:$0xf0] %vm66_vm0, %v507_v18   ;;  %v527_v22 = vunpack.i.h.bf16 %v525_v20  ;;  %v526_v23 = vunpack.i.l.bf16 %v525_v20  ;;  %v522_v24 = vunpack.i.h.bf16 %v520_v21  ;;  %v521_v25 = vunpack.i.l.bf16 %v520_v21 }
  0x82   :  { %113 = vst.msk [vmem:[#allocation0 + $0x81] ss:$8 sm:$0xf] %vm66_vm0, %v506_v19   ;;  %115 = vst.msk [vmem:[#allocation0 + $0x81] ss:$8 sm:$0xf0] %vm66_vm0, %v506_v19  }
  0x83   :  { %192 = vst.msk [vmem:[#allocation0 + $0xc3] ss:$8 sm:$0xf] %vm66_vm0, %v527_v22   ;;  %194 = vst.msk [vmem:[#allocation0 + $0xc3] ss:$8 sm:$0xf0] %vm66_vm0, %v527_v22  }
  0x84   :  { %183 = vst.msk [vmem:[#allocation0 + $0x83] ss:$8 sm:$0xf] %vm66_vm0, %v526_v23   ;;  %185 = vst.msk [vmem:[#allocation0 + $0x83] ss:$8 sm:$0xf0] %vm66_vm0, %v526_v23  }
  0x85   :  { %174 = vst.msk [vmem:[#allocation0 + $0x43] ss:$8 sm:$0xf] %vm66_vm0, %v522_v24   ;;  %176 = vst.msk [vmem:[#allocation0 + $0x43] ss:$8 sm:$0xf0] %vm66_vm0, %v522_v24  }
  0x86   :  { %165 = vst.msk [vmem:[#allocation0 + $0x3] ss:$8 sm:$0xf] %vm66_vm0, %v521_v25   ;;  %167 = vst.msk [vmem:[#allocation0 + $0x3] ss:$8 sm:$0xf0] %vm66_vm0, %v521_v25  }
  0x8a   :  { %v364_v41 = vld [vmem:[#allocation0 + $0xc0] sm:$0xf]  ;;  %v371_v45 = vld [vmem:[#allocation0 + $0xc8] sm:$0xf]  ;;  %v378_v46 = vld [vmem:[#allocation0 + $0xd0] sm:$0xf] }
  0x8b   :  { %v308_v26 = vld [vmem:[#allocation0 + $0x80] sm:$0xf]  ;;  %v315_v27 = vld [vmem:[#allocation0 + $0x88] sm:$0xf]  ;;  %v322_v28 = vld [vmem:[#allocation0 + $0x90] sm:$0xf]  ;;  %v365_v44 = vpack.c.bf16 %v531_v29, %v364_v41  ;;  %v372_v48 = vpack.c.bf16 %v531_v29, %v371_v45  ;;  %v379_v49 = vpack.c.bf16 %v531_v29, %v378_v46 }
  0x8c   :  { %v309_v30 = vpack.c.bf16 %v531_v29, %v308_v26  ;;  %v316_v31 = vpack.c.bf16 %v531_v29, %v315_v27  ;;  %v323_v32 = vpack.c.bf16 %v531_v29, %v322_v28  ;;  %v329_v33 = vld [vmem:[#allocation0 + $0x98] sm:$0xf]  ;;  %v336_v34 = vld [vmem:[#allocation0 + $0xa0] sm:$0xf]  ;;  %v343_v35 = vld [vmem:[#allocation0 + $0xa8] sm:$0xf] }
  0x8d   :  { %v330_v36 = vpack.c.bf16 %v531_v29, %v329_v33  ;;  %v337_v37 = vpack.c.bf16 %v531_v29, %v336_v34  ;;  %v344_v38 = vpack.c.bf16 %v531_v29, %v343_v35  ;;  %v350_v39 = vld [vmem:[#allocation0 + $0xb0] sm:$0xf]  ;;  %v357_v40 = vld [vmem:[#allocation0 + $0xb8] sm:$0xf]  ;;  %v392_v51 = vld [vmem:[#allocation0 + $0xe0] sm:$0xf] }
  0x8e   :  { %469 = vst [vmem:[%s709_s1 + $0x20] sm:$0x3] %v309_v30  ;;  %470 = vst [vmem:[%s709_s1 + $0x22] sm:$0x3] %v316_v31  ;;  %v351_v42 = vpack.c.bf16 %v531_v29, %v350_v39  ;;  %v358_v43 = vpack.c.bf16 %v531_v29, %v357_v40  ;;  %v385_v47 = vld [vmem:[#allocation0 + $0xd8] sm:$0xf]  ;;  %v393_v54 = vpack.c.bf16 %v531_v29, %v392_v51 }
  0x8f   :  { %471 = vst [vmem:[%s709_s1 + $0x24] sm:$0x3] %v323_v32  ;;  %472 = vst [vmem:[%s709_s1 + $0x26] sm:$0x3] %v330_v36  ;;  %v386_v50 = vpack.c.bf16 %v531_v29, %v385_v47  ;;  %v399_v52 = vld [vmem:[#allocation0 + $0xe8] sm:$0xf] }
  0x90   :  { %473 = vst [vmem:[%s709_s1 + $0x28] sm:$0x3] %v337_v37  ;;  %474 = vst [vmem:[%s709_s1 + $0x2a] sm:$0x3] %v344_v38  ;;  %v406_v53 = vld [vmem:[#allocation0 + $0xf0] sm:$0xf]  ;;  %v400_v55 = vpack.c.bf16 %v531_v29, %v399_v52 }
  0x91   :  { %475 = vst [vmem:[%s709_s1 + $0x2c] sm:$0x3] %v351_v42  ;;  %476 = vst [vmem:[%s709_s1 + $0x2e] sm:$0x3] %v358_v43  ;;  %v407_v56 = vpack.c.bf16 %v531_v29, %v406_v53  ;;  %v413_v57 = vld [vmem:[#allocation0 + $0xf8] sm:$0xf] }
  0x92   :  { %477 = vst [vmem:[%s709_s1 + $0x30] sm:$0x3] %v365_v44  ;;  %v252_v58 = vld [vmem:[#allocation0 + $0x40] sm:$0xf]  ;;  %v259_v59 = vld [vmem:[#allocation0 + $0x48] sm:$0xf]  ;;  %v414_v60 = vpack.c.bf16 %v531_v29, %v413_v57 }
  0x93   :  { %478 = vst [vmem:[%s709_s1 + $0x32] sm:$0x3] %v372_v48  ;;  %479 = vst [vmem:[%s709_s1 + $0x34] sm:$0x3] %v379_v49  ;;  %v253_v61 = vpack.c.bf16 %v531_v29, %v252_v58  ;;  %v260_v62 = vpack.c.bf16 %v531_v29, %v259_v59  ;;  %v266_v63 = vld [vmem:[#allocation0 + $0x50] sm:$0xf] }
  0x94   :  { %480 = vst [vmem:[%s709_s1 + $0x36] sm:$0x3] %v386_v50  ;;  %v273_v0 = vld [vmem:[#allocation0 + $0x58] sm:$0xf]  ;;  %v280_v1 = vld [vmem:[#allocation0 + $0x60] sm:$0xf]  ;;  %v267_v2 = vpack.c.bf16 %v531_v29, %v266_v63 }
  0x95   :  { %481 = vst [vmem:[%s709_s1 + $0x38] sm:$0x3] %v393_v54  ;;  %482 = vst [vmem:[%s709_s1 + $0x3a] sm:$0x3] %v400_v55  ;;  %v274_v3 = vpack.c.bf16 %v531_v29, %v273_v0  ;;  %v281_v4 = vpack.c.bf16 %v531_v29, %v280_v1  ;;  %v287_v5 = vld [vmem:[#allocation0 + $0x68] sm:$0xf] }
  0x96   :  { %483 = vst [vmem:[%s709_s1 + $0x3c] sm:$0x3] %v407_v56  ;;  %v294_v6 = vld [vmem:[#allocation0 + $0x70] sm:$0xf]  ;;  %v301_v7 = vld [vmem:[#allocation0 + $0x78] sm:$0xf]  ;;  %v288_v8 = vpack.c.bf16 %v531_v29, %v287_v5 }
  0x97   :  { %484 = vst [vmem:[%s709_s1 + $0x3e] sm:$0x3] %v414_v60  ;;  %461 = vst [vmem:[%s709_s1 + $0x10] sm:$0x3] %v253_v61  ;;  %v295_v9 = vpack.c.bf16 %v531_v29, %v294_v6  ;;  %v302_v10 = vpack.c.bf16 %v531_v29, %v301_v7  ;;  %v199_v11 = vld [vmem:[#allocation0] sm:$0xf] }
  0x98   :  { %462 = vst [vmem:[%s709_s1 + $0x12] sm:$0x3] %v260_v62  ;;  %v204_v12 = vld [vmem:[#allocation0 + $0x8] sm:$0xf]  ;;  %v210_v13 = vld [vmem:[#allocation0 + $0x10] sm:$0xf]  ;;  %v200_v14 = vpack.c.bf16 %v531_v29, %v199_v11 }
  0x99   :  { %463 = vst [vmem:[%s709_s1 + $0x14] sm:$0x3] %v267_v2  ;;  %464 = vst [vmem:[%s709_s1 + $0x16] sm:$0x3] %v274_v3  ;;  %v205_v15 = vpack.c.bf16 %v531_v29, %v204_v12  ;;  %v211_v16 = vpack.c.bf16 %v531_v29, %v210_v13  ;;  %v217_v17 = vld [vmem:[#allocation0 + $0x18] sm:$0xf] }
  0x9a   :  { %465 = vst [vmem:[%s709_s1 + $0x18] sm:$0x3] %v281_v4  ;;  %v224_v18 = vld [vmem:[#allocation0 + $0x20] sm:$0xf]  ;;  %v231_v19 = vld [vmem:[#allocation0 + $0x28] sm:$0xf]  ;;  %v218_v20 = vpack.c.bf16 %v531_v29, %v217_v17 }
  0x9b   :  { %466 = vst [vmem:[%s709_s1 + $0x1a] sm:$0x3] %v288_v8  ;;  %467 = vst [vmem:[%s709_s1 + $0x1c] sm:$0x3] %v295_v9  ;;  %v225_v21 = vpack.c.bf16 %v531_v29, %v224_v18  ;;  %v232_v22 = vpack.c.bf16 %v531_v29, %v231_v19  ;;  %v238_v23 = vld [vmem:[#allocation0 + $0x30] sm:$0xf] }
  0x9c   :  { %468 = vst [vmem:[%s709_s1 + $0x1e] sm:$0x3] %v302_v10  ;;  %v245_v24 = vld [vmem:[#allocation0 + $0x38] sm:$0xf]  ;;  %202 = vst [vmem:[%s709_s1] sm:$0x3] %v200_v14  ;;  %v239_v25 = vpack.c.bf16 %v531_v29, %v238_v23 }
  0x9d   :  { %454 = vst [vmem:[%s709_s1 + $0x2] sm:$0x3] %v205_v15  ;;  %455 = vst [vmem:[%s709_s1 + $0x4] sm:$0x3] %v211_v16  ;;  %v246_v26 = vpack.c.bf16 %v531_v29, %v245_v24 }
  0x9e   :  { %456 = vst [vmem:[%s709_s1 + $0x6] sm:$0x3] %v218_v20  ;;  %457 = vst [vmem:[%s709_s1 + $0x8] sm:$0x3] %v225_v21 }
  0x9f   :  { %458 = vst [vmem:[%s709_s1 + $0xa] sm:$0x3] %v232_v22  ;;  %459 = vst [vmem:[%s709_s1 + $0xc] sm:$0x3] %v239_v25 }
  0xa0   :  { %460 = vst [vmem:[%s709_s1 + $0xe] sm:$0x3] %v246_v26 }

// kernel: vae_forward.1
= control target key start
LH: loop header
LB: loop body
LE: loop exit
PB: predicated region body
PF: predicated region fallthrough
CT: control target
= control target key end

     0   :  { %v1012_v1 = vmov 0   ;;  %s1013_s15 = smov 7   ;;  %s1014_s16 = smov 5   ;;  %vm134_vm0 = vcmask 130048   ;;  %v1021_v45 = vmov 0.0   ;;  %vm1022_vm1 = vmmov 0   ;;  %s1279_s0 = inlined_call_operand.vmem [shape: bf16[16,128], index: 0, kind: input, shape index: {}]   ;;  %s1280_s3 = inlined_call_operand.vmem [shape: bf16[32,144], index: 3, kind: input, shape index: {}]   ;;  %s1281_s4 = inlined_call_operand.vmem [shape: f32[32,1], index: 4, kind: input, shape index: {}]   ;;  %s1282_s2 = inlined_call_operand.vmem [shape: f32[1,128], index: 2, kind: input, shape index: {}]   ;;  %s1283_s5 = inlined_call_operand.vmem [shape: bf16[16,288], index: 5, kind: input, shape index: {}]   ;;  %s1284_s6 = inlined_call_operand.vmem [shape: f32[16,1], index: 6, kind: input, shape index: {}]   ;;  %s1285_s8 = inlined_call_operand.vmem [shape: f32[8,1], index: 8, kind: input, shape index: {}]   ;;  %s1286_s7 = inlined_call_operand.vmem [shape: f32[8,16], index: 7, kind: input, shape index: {}]   ;;  %s1287_s13 = inlined_call_operand.vmem [shape: f32[8,128], index: 13, kind: output, shape index: {0}]   ;;  %s1288_s1 = inlined_call_operand.vmem [shape: f32[4,128], index: 1, kind: input, shape index: {}]   ;;  %s1289_s9 = inlined_call_operand.vmem [shape: bf16[32,36], index: 9, kind: input, shape index: {}]   ;;  %s1290_s10 = inlined_call_operand.vmem [shape: f32[32,1], index: 10, kind: input, shape index: {}]   ;;  %s1291_s11 = inlined_call_operand.vmem [shape: bf16[16,288], index: 11, kind: input, shape index: {}]   ;;  %s1292_s12 = inlined_call_operand.vmem [shape: f32[16,1], index: 12, kind: input, shape index: {}]   ;;  %s1293_s14 = inlined_call_operand.vmem [shape: f32[16,128], index: 14, kind: output, shape index: {1}]  }
   0x1   :  { %v985_v0 = vld [vmem:[%s1279_s0] sm:$0xff]   ;;  %141 = vmatprep.subr.bf16.mxu0 %v1012_v1  ;;  %984 = vset.pattern.permute.xlu1 %v1012_v1  ;;  %s1015_s17 = smov 6   ;;  %s1294_s18 = smov 1   ;;  %v93_v3 = vld [vmem:[%s1281_s4 + $0x8] sm:$0xff]  ;;  %v94_v5 = vld [vmem:[%s1281_s4 + $0x10] sm:$0xff]  ;;  %vm303_vm2 = vcmask 261120  }
   0x2   :  { %983 = vset.pattern.permute.xlu0 %v1012_v1  ;;  %67 = vrot.lane.b32.xlu1 %v985_v0, %s1014_s16  ;;  %s1017_s19 = smov 127   ;;  %s1018_s0 = smov 123   ;;  %v988_v2 = vld [vmem:[%s1280_s3 + $0x4] ss:$8 sps:$4 sm:$0xff]   ;;  %v95_v6 = vld [vmem:[%s1281_s4 + $0x18] sm:$0xff]  ;;  %vm581_vm3 = vcmask 293888  }
   0x3   :  { %59 = vrot.lane.b32.xlu0 %v985_v0, %s1013_s15  ;;  %s1019_s20 = smov 122   ;;  %s1020_s21 = smov 121   ;;  %858 = vmatprep.mubr.msk.bf16.mxu0 %vm134_vm0, %v988_v2  ;;  %v92_v4 = vld [vmem:[%s1281_s4] sm:$0xff]  ;;  %v989_v16 = vld [vmem:[%s1280_s3 + $0x14] ss:$8 sps:$4 sm:$0xff]   ;;  %v277_v49 = vld [vmem:[%s1284_s6 + $0x8] sm:$0xff] }
   0x4   :  { %v986_v15 = vld [vmem:[%s1280_s3] ss:$8 sps:$4 sm:$0xff]   ;;  %v991_v17 = vld [vmem:[%s1280_s3 + $0x10] ss:$8 sps:$4 sm:$0xff]   ;;  %s1296_s28 = smov 1   ;;  %vm529_vm4 = vcmask 1041408  }
   0x5   :  { %v1139_v27 = vld [vmem:[%s1282_s2] ss:$0 sm:$0xff]  ;;  %v994_v46 = vld [vmem:[%s1283_s5 + $0x4] ss:$12 sps:$4 sm:$0xff]   ;;  %v995_v2 = vld [vmem:[%s1283_s5 + $0x8] ss:$12 sps:$4 sm:$0xff]  }
   0x6   :  { %71 = vrot.lane.b32.xlu1 %v985_v0, %s1294_s18  ;;  %339 = vmatprep.mubr.bf16.mxu1 %v994_v46  ;;  %v276_v47 = vld [vmem:[%s1284_s6] sm:$0xff]  ;;  %v550_v46 = vld [vmem:[%s1290_s10 + $0x18] sm:$0xff]  ;;  %vm532_vm5 = vcmask 1043456   ;;  %vm535_vm6 = vcmask 1045504  }
   0x7   :  { %63 = vrot.lane.b32.xlu0 %v985_v0, %s1015_s17  ;;  %v394_v48 = vld [vmem:[%s1285_s8] sm:$0xff] }
   0xa   :  { %79 = vrot.lane.b32.xlu1 %v985_v0, %s1018_s0 }
   0xb   :  { %75 = vrot.lane.b32.xlu0 %v985_v0, %s1017_s19 }
   0xe   :  { %87 = vrot.lane.b32.xlu1 %v985_v0, %s1020_s21 }
   0xf   :  { %83 = vrot.lane.b32.xlu0 %v985_v0, %s1019_s20 }
  0x12   :  { %103 = vperm.xlu1 %984, %v93_v3  }
  0x13   :  { %98 = vperm.xlu0 %983, %v92_v4   ;;  %v1023_v4 = vmov 0.0|0.0  }
  0x16   :  { %108 = vperm.xlu1 %984, %v94_v5  }
  0x17   :  { %113 = vperm.xlu0 %983, %v95_v6  }
  0x74   :  { %v68_v9 = vpop.permute.xlu1 %67 }
  0x75   :  { %v60_v7 = vpop.permute.xlu0 %59 }
  0x76   :  { %142 = vmatpush1.bf16.msra.mxu0 %v60_v7 }
  0x77   :  { %143 = vmatprep.subr.bf16.mxu0 %v1012_v1 }
  0x78   :  { %v72_v10 = vpop.permute.xlu1 %71 }
  0x79   :  { %v64_v8 = vpop.permute.xlu0 %63 }
  0x7a   :  { %144 = vmatpush1.bf16.msra.mxu0 %v64_v8 }
  0x7b   :  { %145 = vmatprep.subr.bf16.mxu0 %v1012_v1 }
  0x7c   :  { %v80_v12 = vpop.permute.xlu1 %79 }
  0x7d   :  { %v76_v11 = vpop.permute.xlu0 %75 }
  0x7e   :  { %146 = vmatpush1.bf16.msra.mxu0 %v68_v9 }
  0x7f   :  { %147 = vmatprep.subr.bf16.mxu0 %v1012_v1 }
  0x80   :  { %v88_v14 = vpop.permute.xlu1 %87 }
  0x81   :  { %v84_v13 = vpop.permute.xlu0 %83 }
  0x82   :  { %148 = vmatpush1.bf16.msra.mxu0 %v72_v10 }
  0x83   :  { %149 = vmatprep.subr.bf16.mxu0 %v1012_v1 }
  0x86   :  { %150 = vmatpush1.bf16.msra.mxu0 %v985_v0 }
  0x87   :  { %151 = vmatprep.subr.bf16.mxu0 %v1012_v1 }
  0x8a   :  { %152 = vmatpush1.bf16.msra.mxu0 %v76_v11 }
  0x8b   :  { %153 = vmatprep.subr.bf16.mxu0 %v1012_v1 }
  0x8e   :  { %154 = vmatpush1.bf16.msra.mxu0 %v80_v12 }
  0x8f   :  { %155 = vmatprep.subr.bf16.mxu0 %v1012_v1 }
  0x91   :  { %v104_v19 = vpop.permute.xlu1 %103 }
  0x92   :  { %156 = vmatpush1.bf16.msra.mxu0 %v84_v13  ;;  %v99_v18 = vpop.permute.xlu0 %98 }
  0x93   :  { %157 = vmatprep.subr.bf16.mxu0 %v1012_v1  ;;  %v992_v1 = vld [vmem:[%s1283_s5] ss:$12 sps:$4 sm:$0xff]  }
  0x95   :  { %v109_v31 = vpop.permute.xlu1 %108 }
  0x96   :  { %158 = vmatpush1.bf16.msra.mxu0 %v88_v14  ;;  %v114_v36 = vpop.permute.xlu0 %113 }
  0x97   :  { %934 = vmatprep.subr.bf16.mxu0 %v1021_v45 }
  0x99   :  { %174 = vmatmul.mubr.bf16.vlgmr.msra.gmra.mrb[0].mxu0 %v986_v15 }
  0x9a   :  { %859 = vmatprep.mubr.msk.bf16.mxu0 %vm134_vm0, %v989_v16 }
  0xa1   :  { %182 = vmatmul.mubr.bf16.gmra.mrb[4].mxu0 %v991_v17 }
  0xa2   :  { %938 = vmatprep.mubr.msk.bf16.mxu0 %vm1022_vm1, %v1021_v45 }
 0x16c   :  { %v175_v20 = vpop.f32.mrb[0].mxu0 }
 0x16d   :  { %v176_v21 = vadd.f32 %v175_v20, %v99_v18  ;;  %v177_v22 = vpop.f32.mrb[1].mxu0 }
 0x16e   :  { %v178_v23 = vpop.f32.mrb[2].mxu0 }
 0x16f   :  { %v190_v24 = vmax.f32 %v176_v21, 0.0  ;;  %v179_v25 = vadd.f32 %v178_v23, %v104_v19  ;;  %v180_v26 = vpop.f32.mrb[3].mxu0 }
 0x170   :  { %v393_v26 = vld [vmem:[%s1286_s7] sm:$0xff] }
 0x171   :  { %v191_v28 = vmax.f32 %v179_v25, 0.0  ;;  %v200_v29 = vmul.f32 %v1139_v27, %v190_v24 }
 0x173   :  { %v201_v30 = vmul.f32 %v1139_v27, %v191_v28 }
 0x174   :  { %v183_v32 = vpop.f32.mrb[4].mxu0 }
 0x175   :  { %v204_v33 = vpack.c.bf16 %v201_v30, %v200_v29  ;;  %v184_v34 = vadd.f32 %v183_v32, %v109_v31  ;;  %v185_v35 = vpop.f32.mrb[5].mxu0 }
 0x176   :  { %v186_v37 = vpop.f32.mrb[6].mxu0 }
 0x177   :  { %v192_v38 = vmax.f32 %v184_v34, 0.0  ;;  %v187_v39 = vadd.f32 %v186_v37, %v114_v36  ;;  %v188_v40 = vpop.f32.mrb[7].mxu0  ;;  %212 = vrot.lane.b32.xlu1 %v204_v33, %s1013_s15  ;;  %876 = vmatprep.subr.bf16.mxu1 %v204_v33  ;;  %v477_v34 = vld [vmem:[%s1288_s1] sm:$0xf] }
 0x178   :  { %v479_v35 = vrot.slane %v477_v34, 4 }
 0x179   :  { %v193_v41 = vmax.f32 %v187_v39, 0.0  ;;  %v202_v42 = vmul.f32 %v1139_v27, %v192_v38 }
 0x17b   :  { %v203_v43 = vmul.f32 %v1139_v27, %v193_v41  ;;  %244 = vrot.lane.b32.xlu1 %v204_v33, %s1017_s19 }
 0x17d   :  { %v205_v44 = vpack.c.bf16 %v203_v43, %v202_v42  ;;  %v996_v42 = vld [vmem:[%s1289_s9] sm:$0xff]   ;;  %v548_v43 = vld [vmem:[%s1290_s10 + $0x8] sm:$0xff] }
 0x17f   :  { %246 = vrot.lane.b32.xlu1 %v205_v44, %s1017_s19  ;;  %214 = vrot.lane.b32.xlu0 %v205_v44, %s1013_s15 }
 0x183   :  { %252 = vrot.lane.b32.xlu1 %v204_v33, %s1018_s0  ;;  %220 = vrot.lane.b32.xlu0 %v204_v33, %s1015_s17 }
 0x187   :  { %254 = vrot.lane.b32.xlu1 %v205_v44, %s1018_s0  ;;  %222 = vrot.lane.b32.xlu0 %v205_v44, %s1015_s17 }
 0x18b   :  { %260 = vrot.lane.b32.xlu1 %v204_v33, %s1019_s20  ;;  %228 = vrot.lane.b32.xlu0 %v204_v33, %s1014_s16 }
 0x18f   :  { %262 = vrot.lane.b32.xlu1 %v205_v44, %s1019_s20  ;;  %230 = vrot.lane.b32.xlu0 %v205_v44, %s1014_s16 }
 0x193   :  { %268 = vrot.lane.b32.xlu1 %v204_v33, %s1020_s21  ;;  %236 = vrot.lane.b32.xlu0 %v204_v33, %s1296_s28 }
 0x197   :  { %280 = vperm.xlu1 %984, %v276_v47   ;;  %238 = vrot.lane.b32.xlu0 %v205_v44, %s1296_s28  ;;  %v549_v47 = vld [vmem:[%s1290_s10 + $0x10] sm:$0xff] }
 0x19b   :  { %397 = vperm.xlu1 %984, %v394_v48   ;;  %270 = vrot.lane.b32.xlu0 %v205_v44, %s1020_s21 }
 0x19f   :  { %285 = vperm.xlu0 %983, %v277_v49  }
 0x1e9   :  { %v213_v50 = vpop.permute.xlu1 %212 }
 0x1ea   :  { %877 = vmatpush3.bf16.msra.mxu1 %v213_v50 }
 0x1eb   :  { %878 = vmatprep.subr.bf16.mxu1 %v205_v44  ;;  %v547_v44 = vld [vmem:[%s1290_s10] sm:$0xff] }
 0x1ed   :  { %v245_v51 = vpop.permute.xlu1 %244 }
 0x1f1   :  { %v247_v52 = vpop.permute.xlu1 %246  ;;  %v215_v53 = vpop.permute.xlu0 %214 }
 0x1f2   :  { %879 = vmatpush3.bf16.msra.mxu1 %v215_v53 }
 0x1f3   :  { %880 = vmatprep.subr.bf16.mxu1 %v245_v51 }
 0x1f5   :  { %v253_v54 = vpop.permute.xlu1 %252  ;;  %v221_v55 = vpop.permute.xlu0 %220 }
 0x1f6   :  { %881 = vmatpush3.bf16.msra.mxu1 %v221_v55 }
 0x1f7   :  { %882 = vmatprep.subr.bf16.mxu1 %v247_v52 }
 0x1f9   :  { %v255_v56 = vpop.permute.xlu1 %254  ;;  %v223_v57 = vpop.permute.xlu0 %222 }
 0x1fa   :  { %883 = vmatpush3.bf16.msra.mxu1 %v223_v57 }
 0x1fb   :  { %884 = vmatprep.subr.bf16.mxu1 %v253_v54 }
 0x1fd   :  { %v261_v58 = vpop.permute.xlu1 %260  ;;  %v229_v59 = vpop.permute.xlu0 %228 }
 0x1fe   :  { %885 = vmatpush3.bf16.msra.mxu1 %v229_v59 }
 0x1ff   :  { %886 = vmatprep.subr.bf16.mxu1 %v255_v56 }
 0x201   :  { %v263_v60 = vpop.permute.xlu1 %262  ;;  %v231_v61 = vpop.permute.xlu0 %230 }
 0x202   :  { %887 = vmatpush3.bf16.msra.mxu1 %v231_v61 }
 0x203   :  { %888 = vmatprep.subr.bf16.mxu1 %v261_v58 }
 0x205   :  { %v269_v62 = vpop.permute.xlu1 %268  ;;  %v237_v63 = vpop.permute.xlu0 %236 }
 0x206   :  { %889 = vmatpush3.bf16.msra.mxu1 %v237_v63  ;;  %935 = vmatpush3.bf16.msra.mxu0 %v269_v62 }
 0x207   :  { %890 = vmatprep.subr.bf16.mxu1 %v263_v60  ;;  %936 = vmatprep.subr.bf16.mxu0 %v1021_v45 }
 0x209   :  { %v239_v0 = vpop.permute.xlu0 %238 }
 0x20a   :  { %891 = vmatpush3.bf16.msra.mxu1 %v239_v0 }
 0x20b   :  { %967 = vmatprep.subr.bf16.mxu1 %v1023_v4 }
 0x20d   :  { %v271_v3 = vpop.permute.xlu0 %270  ;;  %340 = vmatmul.mubr.bf16.vlgmr.msra.gmra.mrb[0].mxu1 %v992_v1 }
 0x20e   :  { %937 = vmatpush3.bf16.msra.mxu0 %v271_v3  ;;  %946 = vmatprep.mubr.msk.f32.mxu1 %vm1022_vm1, %v1021_v45 }
 0x211   :  { %939 = vmatmul.mubr.msk.bf16.vlgmr.msra.gmra.mrb[8].mxu0 %vm303_vm2, %v995_v2 }
 0x212   :  { %955 = vmatprep.mubr.msk.bf16.mxu0 %vm581_vm3, %v996_v42 }
 0x216   :  { %v281_v9 = vpop.permute.xlu1 %280 }
 0x21a   :  { %v398_v28 = vpop.permute.xlu1 %397 }
 0x21e   :  { %v286_v14 = vpop.permute.xlu0 %285 }
 0x2e0   :  { %v892_v5 = vpop.f32.mrb[0].mxu1 }
 0x2e1   :  { %v893_v6 = vpop.f32.mrb[1].mxu1 }
 0x2e2   :  { %v894_v7 = vadd.f32 %v893_v6, %v892_v5  ;;  %v895_v8 = vpop.f32.mrb[2].mxu1  ;;  %v997_v5 = vld [vmem:[%s1289_s9 + $0x8] sm:$0xff]  }
 0x2e3   :  { %v896_v10 = vpop.f32.mrb[3].mxu1 }
 0x2e4   :  { %v897_v11 = vadd.f32 %v896_v10, %v895_v8  ;;  %v342_v12 = vadd.f32 %v894_v7, %v281_v9  ;;  %v382_v13 = vpop.f32.mrb[8].mxu0 }
 0x2e5   :  { %v940_v15 = vpop.f32.mrb[9].mxu0 }
 0x2e6   :  { %v383_v16 = vadd.f32 %v382_v13, %v342_v12  ;;  %v345_v17 = vadd.f32 %v897_v11, %v286_v14  ;;  %v385_v18 = vpop.f32.mrb[10].mxu0 }
 0x2e7   :  { %v941_v19 = vpop.f32.mrb[11].mxu0 }
 0x2e8   :  { %v389_v20 = vmax.f32 %v383_v16, 0.0  ;;  %v386_v21 = vadd.f32 %v385_v18, %v345_v17 }
 0x2ea   :  { %v390_v22 = vmax.f32 %v386_v21, 0.0  ;;  %v391_v23 = vmul.f32 %v1139_v27, %v389_v20 }
 0x2ec   :  { %v392_v24 = vmul.f32 %v1139_v27, %v390_v22 }
 0x2ee   :  { %v968_v25 = vpack.c.bf16 %v392_v24, %v391_v23 }
 0x2f0   :  { %969 = vmatpush3.bf16.msra.mxu1 %v968_v25 }
 0x2f3   :  { %947 = vmatmul.mubr.msk.f32.vlgmr.msra.gmra.mrb[4].mxu1 %vm134_vm0, %v393_v26 }
 0x3c6   :  { %v469_v29 = vpop.f32.mrb[4].mxu1 }
 0x3c7   :  { %v470_v30 = vadd.f32 %v469_v29, %v398_v28  ;;  %v948_v31 = vpop.f32.mrb[5].mxu1  ;;  %v720_v29 = vld [vmem:[%s1292_s12 + $0x8] sm:$0xff] }
 0x3c9   :  { %473 = vst [vmem:[%s1287_s13] sm:$0xff] %v470_v30  ;;  %v474_v32 = vmul.f32 0.5, %v470_v30 }
 0x3cb   :  { %v475_v33 = vmul.f32 1.442695, %v474_v32 }
 0x3cd   :  { %1002 = vpow2.f32 %v475_v33 }
 0x3d7   :  { %v1003_v36 = vpop.eup %1002 }
 0x3d8   :  { %v481_v37 = vmul.f32 %v1003_v36, %v479_v35 }
 0x3da   :  { %v483_v38 = vrot.slane %v481_v37, 4 }
 0x3dc   :  { %v485_v39 = vadd.f32 %v483_v38, %v470_v30  ;;  %v719_v30 = vld [vmem:[%s1292_s12] sm:$0xff] }
 0x3de   :  { %v486_v40 = vmul.f32 %v1139_v27, %v485_v39 }
 0x3e0   :  { %v487_v41 = vpack.c.bf16 %v486_v40, %v486_v40 }
 0x3e2   :  { %499 = vrot.lane.b32.xlu1 %v487_v41, %s1014_s16  ;;  %496 = vrot.lane.b32.xlu0 %v487_v41, %s1015_s17 }
 0x3e6   :  { %502 = vrot.lane.b32.xlu1 %v487_v41, %s1296_s28  ;;  %493 = vrot.lane.b32.xlu0 %v487_v41, %s1013_s15 }
 0x3ea   :  { %508 = vrot.lane.b32.xlu1 %v487_v41, %s1018_s0  ;;  %505 = vrot.lane.b32.xlu0 %v487_v41, %s1017_s19 }
 0x3ee   :  { %514 = vrot.lane.b32.xlu1 %v487_v41, %s1020_s21  ;;  %511 = vrot.lane.b32.xlu0 %v487_v41, %s1019_s20 }
 0x3f2   :  { %558 = vperm.xlu1 %984, %v548_v43   ;;  %553 = vperm.xlu0 %983, %v547_v44  }
 0x3f6   :  { %568 = vperm.xlu1 %984, %v550_v46   ;;  %563 = vperm.xlu0 %983, %v549_v47   ;;  %v998_v47 = vld [vmem:[%s1291_s11] ss:$12 sps:$4 sm:$0xff]  }
 0x454   :  { %v500_v48 = vpop.permute.xlu1 %499  ;;  %v497_v49 = vpop.permute.xlu0 %496 }
 0x455   :  { %v518_v50 = vrot.slane %v497_v49, 6  ;;  %v520_v51 = vrot.slane %v500_v48, 4  ;;  %v1001_v49 = vld [vmem:[%s1291_s11 + $0x8] ss:$12 sps:$4 sm:$0xff]  }
 0x458   :  { %v503_v52 = vpop.permute.xlu1 %502  ;;  %v494_v53 = vpop.permute.xlu0 %493 }
 0x459   :  { %v522_v54 = vrot.slane %v503_v52, 2  ;;  %v531_v55 = vsel %vm529_vm4, %v494_v53, %v518_v50 }
 0x45a   :  { %v534_v56 = vsel %vm532_vm5, %v531_v55, %v520_v51 }
 0x45b   :  { %v537_v57 = vsel %vm535_vm6, %v534_v56, %v522_v54 }
 0x45c   :  { %v509_v58 = vpop.permute.xlu1 %508  ;;  %949 = vmatprep.subr.bf16.mxu0 %v537_v57  ;;  %v506_v59 = vpop.permute.xlu0 %505 }
 0x45d   :  { %v524_v60 = vrot.slane %v506_v59, 6  ;;  %950 = vmatpush3.bf16.msra.mxu0 %v537_v57  ;;  %v526_v61 = vrot.slane %v509_v58, 4 }
 0x45f   :  { %v541_v62 = vsel %vm529_vm4, %v487_v41, %v524_v60 }
 0x460   :  { %v512_v63 = vpop.permute.xlu0 %511  ;;  %v543_v1 = vsel %vm532_vm5, %v541_v62, %v526_v61  ;;  %v515_v3 = vpop.permute.xlu1 %514 }
 0x461   :  { %v528_v0 = vrot.slane %v512_v63, 2  ;;  %v588_v4 = vsel %vm529_vm4, %v515_v3, 0 }
 0x463   :  { %v545_v2 = vsel %vm535_vm6, %v543_v1, %v528_v0 }
 0x464   :  { %951 = vmatprep.subr.bf16.mxu0 %v545_v2 }
 0x465   :  { %952 = vmatpush3.bf16.msra.mxu0 %v545_v2 }
 0x466   :  { %970 = vmatprep.subr.msk.bf16.mxu0 %vm529_vm4, %v515_v3 }
 0x469   :  { %954 = vmatpush3.bf16.msra.mxu0 %v588_v4 }
 0x46a   :  { %959 = vmatprep.subr.bf16.mxu0 %v1021_v45 }
 0x46c   :  { %956 = vmatmul.mubr.msk.bf16.vlgmr.msra.gmra.mrb[12].mxu0 %vm581_vm3, %v997_v5 }
 0x46d   :  { %963 = vmatprep.mubr.msk.bf16.mxu0 %vm1022_vm1, %v1021_v45 }
 0x471   :  { %v554_v6 = vpop.permute.xlu0 %553  ;;  %v559_v7 = vpop.permute.xlu1 %558 }
 0x475   :  { %v564_v8 = vpop.permute.xlu0 %563  ;;  %v569_v12 = vpop.permute.xlu1 %568 }
 0x53f   :  { %v957_v9 = vpop.f32.mrb[12].mxu0 }
 0x540   :  { %v633_v10 = vadd.f32 %v957_v9, %v564_v8  ;;  %v624_v11 = vpop.f32.mrb[13].mxu0 }
 0x541   :  { %v625_v13 = vadd.f32 %v624_v11, %v554_v6  ;;  %v958_v14 = vpop.f32.mrb[14].mxu0 }
 0x542   :  { %v641_v15 = vmax.f32 %v633_v10, 0.0  ;;  %v636_v16 = vadd.f32 %v958_v14, %v569_v12  ;;  %v627_v17 = vpop.f32.mrb[15].mxu0 }
 0x543   :  { %v639_v18 = vmax.f32 %v625_v13, 0.0  ;;  %v628_v19 = vadd.f32 %v627_v17, %v559_v7 }
 0x544   :  { %v642_v20 = vmax.f32 %v636_v16, 0.0  ;;  %v645_v22 = vmul.f32 %v1139_v27, %v641_v15 }
 0x545   :  { %v640_v21 = vmax.f32 %v628_v19, 0.0  ;;  %v643_v24 = vmul.f32 %v1139_v27, %v639_v18 }
 0x546   :  { %v646_v23 = vmul.f32 %v1139_v27, %v642_v20 }
 0x547   :  { %v644_v25 = vmul.f32 %v1139_v27, %v640_v21  ;;  %v1000_v27 = vld [vmem:[%s1291_s11 + $0x4] ss:$12 sps:$4 sm:$0xff]  }
 0x548   :  { %v652_v26 = vpack.c.bf16 %v646_v23, %v645_v22  ;;  %781 = vmatprep.mubr.bf16.mxu1 %v1000_v27 }
 0x549   :  { %v651_v28 = vpack.c.bf16 %v644_v25, %v643_v24 }
 0x54a   :  { %657 = vrot.lane.b32.xlu1 %v652_v26, %s1013_s15 }
 0x54b   :  { %655 = vrot.lane.b32.xlu0 %v651_v28, %s1013_s15  ;;  %909 = vmatprep.subr.bf16.mxu1 %v651_v28 }
 0x54e   :  { %663 = vrot.lane.b32.xlu1 %v651_v28, %s1015_s17 }
 0x54f   :  { %687 = vrot.lane.b32.xlu0 %v651_v28, %s1017_s19 }
 0x552   :  { %665 = vrot.lane.b32.xlu1 %v652_v26, %s1015_s17 }
 0x553   :  { %689 = vrot.lane.b32.xlu0 %v652_v26, %s1017_s19 }
 0x556   :  { %671 = vrot.lane.b32.xlu1 %v651_v28, %s1014_s16 }
 0x557   :  { %695 = vrot.lane.b32.xlu0 %v651_v28, %s1018_s0 }
 0x55a   :  { %673 = vrot.lane.b32.xlu1 %v652_v26, %s1014_s16 }
 0x55b   :  { %697 = vrot.lane.b32.xlu0 %v652_v26, %s1018_s0 }
 0x55e   :  { %679 = vrot.lane.b32.xlu1 %v651_v28, %s1296_s28 }
 0x55f   :  { %703 = vrot.lane.b32.xlu0 %v651_v28, %s1019_s20 }
 0x562   :  { %681 = vrot.lane.b32.xlu1 %v652_v26, %s1296_s28 }
 0x563   :  { %705 = vrot.lane.b32.xlu0 %v652_v26, %s1019_s20 }
 0x566   :  { %713 = vrot.lane.b32.xlu1 %v652_v26, %s1020_s21 }
 0x567   :  { %711 = vrot.lane.b32.xlu0 %v651_v28, %s1020_s21 }
 0x56a   :  { %728 = vperm.xlu1 %984, %v720_v29  }
 0x56b   :  { %723 = vperm.xlu0 %983, %v719_v30  }
 0x5bc   :  { %v658_v31 = vpop.permute.xlu1 %657 }
 0x5bd   :  { %v656_v32 = vpop.permute.xlu0 %655 }
 0x5be   :  { %910 = vmatpush3.bf16.msra.mxu1 %v656_v32 }
 0x5bf   :  { %911 = vmatprep.subr.bf16.mxu1 %v652_v26 }
 0x5c0   :  { %v664_v33 = vpop.permute.xlu1 %663 }
 0x5c1   :  { %v688_v34 = vpop.permute.xlu0 %687 }
 0x5c2   :  { %912 = vmatpush3.bf16.msra.mxu1 %v658_v31 }
 0x5c3   :  { %913 = vmatprep.subr.bf16.mxu1 %v688_v34 }
 0x5c4   :  { %v666_v35 = vpop.permute.xlu1 %665 }
 0x5c5   :  { %v690_v36 = vpop.permute.xlu0 %689 }
 0x5c6   :  { %914 = vmatpush3.bf16.msra.mxu1 %v664_v33 }
 0x5c7   :  { %915 = vmatprep.subr.bf16.mxu1 %v690_v36 }
 0x5c8   :  { %v672_v37 = vpop.permute.xlu1 %671 }
 0x5c9   :  { %v696_v38 = vpop.permute.xlu0 %695 }
 0x5ca   :  { %916 = vmatpush3.bf16.msra.mxu1 %v666_v35 }
 0x5cb   :  { %917 = vmatprep.subr.bf16.mxu1 %v696_v38 }
 0x5cc   :  { %v674_v39 = vpop.permute.xlu1 %673 }
 0x5cd   :  { %v698_v40 = vpop.permute.xlu0 %697 }
 0x5ce   :  { %918 = vmatpush3.bf16.msra.mxu1 %v672_v37 }
 0x5cf   :  { %919 = vmatprep.subr.bf16.mxu1 %v698_v40 }
 0x5d0   :  { %v680_v41 = vpop.permute.xlu1 %679 }
 0x5d1   :  { %v704_v42 = vpop.permute.xlu0 %703 }
 0x5d2   :  { %920 = vmatpush3.bf16.msra.mxu1 %v674_v39 }
 0x5d3   :  { %921 = vmatprep.subr.bf16.mxu1 %v704_v42 }
 0x5d4   :  { %v682_v44 = vpop.permute.xlu1 %681 }
 0x5d5   :  { %v706_v43 = vpop.permute.xlu0 %705 }
 0x5d6   :  { %922 = vmatpush3.bf16.msra.mxu1 %v680_v41 }
 0x5d7   :  { %923 = vmatprep.subr.bf16.mxu1 %v706_v43 }
 0x5d8   :  { %v714_v48 = vpop.permute.xlu1 %713 }
 0x5d9   :  { %v712_v46 = vpop.permute.xlu0 %711 }
 0x5da   :  { %924 = vmatpush3.bf16.msra.mxu1 %v682_v44  ;;  %960 = vmatpush3.bf16.msra.mxu0 %v712_v46 }
 0x5db   :  { %961 = vmatprep.subr.bf16.mxu0 %v1021_v45 }
 0x5dd   :  { %782 = vmatmul.mubr.bf16.vlgmr.msra.gmra.mrb[8].mxu1 %v998_v47 }
 0x5de   :  { %962 = vmatpush3.bf16.msra.mxu0 %v714_v48 }
 0x5e1   :  { %964 = vmatmul.mubr.msk.bf16.vlgmr.msra.gmra.mrb[16].mxu0 %vm303_vm2, %v1001_v49 }
 0x5e9   :  { %v729_v59 = vpop.permute.xlu1 %728 }
 0x5ea   :  { %v724_v54 = vpop.permute.xlu0 %723 }
 0x6b0   :  { %v925_v50 = vpop.f32.mrb[8].mxu1 }
 0x6b1   :  { %v926_v51 = vpop.f32.mrb[9].mxu1 }
 0x6b2   :  { %v927_v52 = vadd.f32 %v926_v51, %v925_v50  ;;  %v928_v53 = vpop.f32.mrb[10].mxu1 }
 0x6b3   :  { %v929_v55 = vpop.f32.mrb[11].mxu1 }
 0x6b4   :  { %v930_v56 = vadd.f32 %v929_v55, %v928_v53  ;;  %v784_v57 = vadd.f32 %v927_v52, %v724_v54  ;;  %v824_v58 = vpop.f32.mrb[16].mxu0 }
 0x6b5   :  { %v965_v45 = vpop.f32.mrb[17].mxu0 }
 0x6b6   :  { %v825_v60 = vadd.f32 %v824_v58, %v784_v57  ;;  %v787_v61 = vadd.f32 %v930_v56, %v729_v59  ;;  %v827_v62 = vpop.f32.mrb[18].mxu0 }
 0x6b7   :  { %v966_v63 = vpop.f32.mrb[19].mxu0 }
 0x6b8   :  { %v874_v0 = vmul.f32 -1.442695, %v825_v60  ;;  %v828_v1 = vadd.f32 %v827_v62, %v787_v61 }
 0x6ba   :  { %1004 = vpow2.f32 %v874_v0  ;;  %v875_v2 = vmul.f32 -1.442695, %v828_v1 }
 0x6bc   :  { %1006 = vpow2.f32 %v875_v2 }
 0x6c4   :  { %v1005_v3 = vpop.eup %1004 }
 0x6c5   :  { %v837_v4 = vadd.f32 1.0, %v1005_v3 }
 0x6c6   :  { %v1007_v5 = vpop.eup %1006 }
 0x6c7   :  { %1008 = vrcp.f32 %v837_v4  ;;  %v838_v6 = vadd.f32 1.0, %v1007_v5 }
 0x6c9   :  { %1010 = vrcp.f32 %v838_v6 }
 0x6d1   :  { %v1009_v7 = vpop.eup %1008 }
 0x6d2   :  { %843 = vst [vmem:[%s1293_s14] sm:$0xff] %v1009_v7 }
 0x6d3   :  { %v1011_v8 = vpop.eup %1010 }
 0x6d4   :  { %844 = vst [vmem:[%s1293_s14 + $0x8] sm:$0xff] %v1011_v8 }

</bundles_post_ra>
